<compile_context>
chip_gen: v6e
topology: v6e:2x2x1
jax: 0.10.0
libtpu: 0.0.40
codegen_flags: <defaults>
</compile_context>

<pallas_src>
import jax
import jax.numpy as jnp
from jax.experimental import pallas as pl
from jax.experimental.pallas import tpu as pltpu

N_DISC = 100
N_OBS = 10
N_ACTION = N_DISC                 # 100 (output width, kept unpadded)
N_STATE = N_DISC + 2 * N_OBS      # 120 (input width, kept unpadded)
HID_P = 128                       # hidden width zero-padded to one lane tile


def _round_up(n, m):
    return ((n + m - 1) // m) * m


def _dqn_kernel(x_ref, w1_ref, b1_ref, w2_ref, b2_ref, w3_ref, b3_ref, o_ref):
    # x arrives f32 (tm, 120); cast to bf16 in VMEM (no wrapper pad/cast pass).
    x = x_ref[...].astype(jnp.bfloat16)
    # fc1 + relu: bf16 MXU matmul (K=120), f32 accumulation; bias+relu in f32.
    # Padded hidden columns stay exactly 0 (zero weight cols, zero bias, relu(0)=0).
    h = jnp.dot(x, w1_ref[...], preferred_element_type=jnp.float32)
    h = jnp.maximum(h + b1_ref[...], 0.0)
    # fc2 + relu
    h = jnp.dot(h.astype(jnp.bfloat16), w2_ref[...],
                preferred_element_type=jnp.float32)
    h = jnp.maximum(h + b2_ref[...], 0.0)
    # fc3 + relu (trailing ReLU kept to match the PyTorch module exactly).
    # N = 100 (unpadded) so only real action columns are ever stored.
    h = jnp.dot(h.astype(jnp.bfloat16), w3_ref[...],
                preferred_element_type=jnp.float32)
    o_ref[...] = jnp.maximum(h + b3_ref[...], 0.0).astype(o_ref.dtype)
    # TODO(synk): if the consumer only needs argmax_a Q(s,a), fuse it here
    # (writing (tm, 1) indices) instead of storing the full Q row.


def prepare_params(params):
    """One-time prep (outside the hot loop):
       * weights stored (in, out); hidden dims zero-padded to 128; cast to bf16
       * biases stay f32 (added to the f32 accumulator)
       * input dim (120) and output dim (100) left unpadded so the kernel
         reads/writes exactly the real activations (no wrapper pad/slice pass).
    """
    def pad_w(w, rows, cols):
        buf = jnp.zeros((rows, cols), jnp.float32)
        buf = buf.at[: w.shape[0], : w.shape[1]].set(w)
        return buf.astype(jnp.bfloat16)

    def pad_b(b, cols):
        buf = jnp.zeros((1, cols), jnp.float32)
        return buf.at[:, : b.shape[1]].set(b)

    return dict(
        w1=pad_w(params["w1"], N_STATE, HID_P),    # (120, 128) bf16
        b1=pad_b(params["b1"], HID_P),             # (1, 128)   f32
        w2=pad_w(params["w2"], HID_P, HID_P),      # (128, 128) bf16
        b2=pad_b(params["b2"], HID_P),             # (1, 128)   f32
        w3=pad_w(params["w3"], HID_P, N_ACTION),   # (128, 100) bf16
        b3=pad_b(params["b3"], N_ACTION),          # (1, 100)   f32
    )


def _choose_tm(batch):
    """Pick the batch tile: choose the step count first, then size the tile to
    minimise padded rows.  Cap at 1024 rows (x/out tiles stay well under VMEM
    limits on every generation, double-buffered); force >= 2 grid steps for
    non-trivial batches so v7x can shard the 'parallel' axis across both TCs."""
    CAP = 1024
    n_steps = max(pl.cdiv(batch, CAP), 1)
    if batch >= 256:
        n_steps = max(n_steps, 2)
    return _round_up(pl.cdiv(batch, n_steps), 8)


@jax.jit
def dqn_forward(x, pp):
    """x: (B, N_STATE) float32, unpadded.  pp: params from prepare_params().
    Returns (B, N_ACTION) float32.  No wrapper pad/cast/slice passes."""
    B = x.shape[0]
    tm = _choose_tm(B)
    grid = (pl.cdiv(B, tm),)

    const = lambda i: (0, 0)          # weights/biases: DMA'd once, VMEM-resident
    batched = lambda i: (i, 0)        # x/out: walk the batch tiles

    return pl.pallas_call(
        _dqn_kernel,
        out_shape=jax.ShapeDtypeStruct((B, N_ACTION), jnp.float32),
        grid=grid,
        in_specs=[
            pl.BlockSpec((tm, N_STATE), batched),       # x, full last dim (120)
            pl.BlockSpec((N_STATE, HID_P), const),      # w1 (120, 128)
            pl.BlockSpec((1, HID_P), const),            # b1
            pl.BlockSpec((HID_P, HID_P), const),        # w2 (128, 128)
            pl.BlockSpec((1, HID_P), const),            # b2
            pl.BlockSpec((HID_P, N_ACTION), const),     # w3 (128, 100)
            pl.BlockSpec((1, N_ACTION), const),         # b3
        ],
        out_specs=pl.BlockSpec((tm, N_ACTION), batched),
        compiler_params=pltpu.CompilerParams(
            dimension_semantics=("parallel",)),         # 2 TCs on v7x
    )(x, pp["w1"], pp["b1"], pp["w2"], pp["b2"], pp["w3"], pp["b3"])


def init_params(key):
    """Deterministic init matching nn.Linear shapes (uniform +/- 1/sqrt(fan_in)).
    Stored as (in, out) so the kernel does x @ W + b."""
    def linear(k, fan_in, fan_out):
        kw, kb = jax.random.split(k)
        bound = 1.0 / jnp.sqrt(float(fan_in))
        w = jax.random.uniform(kw, (fan_in, fan_out), jnp.float32, -bound, bound)
        b = jax.random.uniform(kb, (1, fan_out), jnp.float32, -bound, bound)
        return w, b

    k1, k2, k3 = jax.random.split(key, 3)
    w1, b1 = linear(k1, N_STATE, N_STATE)
    w2, b2 = linear(k2, N_STATE, N_STATE)
    w3, b3 = linear(k3, N_STATE, N_ACTION)
    return dict(w1=w1, b1=b1, w2=w2, b2=b2, w3=w3, b3=b3)


def dqn_reference_f32(x, p):
    h = jnp.maximum(x @ p["w1"] + p["b1"], 0.0)
    h = jnp.maximum(h @ p["w2"] + p["b2"], 0.0)
    return jnp.maximum(h @ p["w3"] + p["b3"], 0.0)


def dqn_reference_bf16(x, p):
    """Reference with the same bf16-input / f32-accumulate matmul recipe."""
    def mm(a, w):
        return jnp.dot(a.astype(jnp.bfloat16), w.astype(jnp.bfloat16),
                       preferred_element_type=jnp.float32)
    h = jnp.maximum(mm(x, p["w1"]) + p["b1"], 0.0)
    h = jnp.maximum(mm(h, p["w2"]) + p["b2"], 0.0)
    return jnp.maximum(mm(h, p["w3"]) + p["b3"], 0.0)


if __name__ == "__main__":
    key = jax.random.PRNGKey(0)
    kx, kx2, kp = jax.random.split(key, 3)

    params = init_params(kp)
    padded_params = prepare_params(params)

    # Small deterministic check (single grid step).
    B = 8
    x = jax.random.normal(kx, (B, N_STATE), jnp.float32)
    out = jax.block_until_ready(dqn_forward(x, padded_params))
    assert out.shape == (B, N_ACTION), out.shape
    assert jnp.allclose(out, dqn_reference_bf16(x, params), atol=1e-3, rtol=1e-3), \
        "mismatch vs bf16 reference (B=8)"
    assert jnp.allclose(out, dqn_reference_f32(x, params), atol=3e-2, rtol=3e-2), \
        "mismatch vs f32 reference (B=8)"

    # Larger, non-divisible batch: exercises multi-step grid + boundary masking
    # (B=300 -> 2 steps of tm=152, only 4 padded rows, never written to HBM).
    B2 = 300
    x2 = jax.random.normal(kx2, (B2, N_STATE), jnp.float32)
    out2 = jax.block_until_ready(dqn_forward(x2, padded_params))
    assert out2.shape == (B2, N_ACTION), out2.shape
    assert jnp.allclose(out2, dqn_reference_bf16(x2, params), atol=1e-3, rtol=1e-3), \
        "mismatch vs bf16 reference (B=300)"
    assert jnp.allclose(out2, dqn_reference_f32(x2, params), atol=3e-2, rtol=3e-2), \
        "mismatch vs f32 reference (B=300)"

    print("KERNEL_OK")
</pallas_src>

<mosaic_0001>
module attributes {stable_mosaic.version = 11 : i64} {
  func.func @_dqn_kernel(%arg0: i32, %arg1: memref<8x120xf32, #tpu.memory_space<vmem>>, %arg2: memref<120x128xbf16, #tpu.memory_space<vmem>>, %arg3: memref<1x128xf32, #tpu.memory_space<vmem>>, %arg4: memref<128x128xbf16, #tpu.memory_space<vmem>>, %arg5: memref<1x128xf32, #tpu.memory_space<vmem>>, %arg6: memref<128x100xbf16, #tpu.memory_space<vmem>>, %arg7: memref<1x100xf32, #tpu.memory_space<vmem>>, %arg8: memref<8x100xf32, #tpu.memory_space<vmem>>) attributes {dimension_semantics = [#tpu.dimension_semantics<parallel>], iteration_bounds = array<i64: 1>, scalar_prefetch = 0 : i64, scratch_operands = 0 : i64, tpu.core_type = #tpu.core_type<tc>, window_params = [{transform_indices = @transform_0, window_bounds = array<i64: 8, 120>}, {pipeline_mode = #tpu.pipeline_mode<synchronous>, transform_indices = @transform_1, window_bounds = array<i64: 120, 128>}, {pipeline_mode = #tpu.pipeline_mode<synchronous>, transform_indices = @transform_2, window_bounds = array<i64: 1, 128>}, {pipeline_mode = #tpu.pipeline_mode<synchronous>, transform_indices = @transform_3, window_bounds = array<i64: 128, 128>}, {pipeline_mode = #tpu.pipeline_mode<synchronous>, transform_indices = @transform_4, window_bounds = array<i64: 1, 128>}, {pipeline_mode = #tpu.pipeline_mode<synchronous>, transform_indices = @transform_5, window_bounds = array<i64: 128, 100>}, {pipeline_mode = #tpu.pipeline_mode<synchronous>, transform_indices = @transform_6, window_bounds = array<i64: 1, 100>}, {transform_indices = @transform_7, window_bounds = array<i64: 8, 100>}]} {
    %c0 = arith.constant 0 : index
    %c0_0 = arith.constant 0 : index
    %0 = vector.load %arg1[%c0, %c0_0] : memref<8x120xf32, #tpu.memory_space<vmem>>, vector<8x120xf32>
    %1 = arith.truncf %0 : vector<8x120xf32> to vector<8x120xbf16>
    %c0_1 = arith.constant 0 : index
    %c0_2 = arith.constant 0 : index
    %2 = vector.load %arg2[%c0_1, %c0_2] : memref<120x128xbf16, #tpu.memory_space<vmem>>, vector<120x128xbf16>
    %cst = arith.constant dense<0.000000e+00> : vector<8x128xf32>
    %3 = tpu.matmul %1, %2, %cst {dimension_numbers = #tpu.dot_dimension_numbers<[1], [0], [0], [1], [0, 0, 1, 1], [], []>} : vector<8x120xbf16>, vector<120x128xbf16>, vector<8x128xf32> -> vector<8x128xf32>
    %c0_3 = arith.constant 0 : index
    %c0_4 = arith.constant 0 : index
    %4 = vector.load %arg3[%c0_3, %c0_4] : memref<1x128xf32, #tpu.memory_space<vmem>>, vector<1x128xf32>
    %5 = vector.broadcast %4 : vector<1x128xf32> to vector<8x128xf32>
    %6 = arith.addf %3, %5 : vector<8x128xf32>
    %cst_5 = arith.constant 0.000000e+00 : f32
    %7 = vector.broadcast %cst_5 : f32 to vector<8x128xf32>
    %8 = arith.maximumf %6, %7 : vector<8x128xf32>
    %9 = arith.truncf %8 : vector<8x128xf32> to vector<8x128xbf16>
    %c0_6 = arith.constant 0 : index
    %c0_7 = arith.constant 0 : index
    %10 = vector.load %arg4[%c0_6, %c0_7] : memref<128x128xbf16, #tpu.memory_space<vmem>>, vector<128x128xbf16>
    %cst_8 = arith.constant dense<0.000000e+00> : vector<8x128xf32>
    %11 = tpu.matmul %9, %10, %cst_8 {dimension_numbers = #tpu.dot_dimension_numbers<[1], [0], [0], [1], [0, 0, 1, 1], [], []>} : vector<8x128xbf16>, vector<128x128xbf16>, vector<8x128xf32> -> vector<8x128xf32>
    %c0_9 = arith.constant 0 : index
    %c0_10 = arith.constant 0 : index
    %12 = vector.load %arg5[%c0_9, %c0_10] : memref<1x128xf32, #tpu.memory_space<vmem>>, vector<1x128xf32>
    %13 = vector.broadcast %12 : vector<1x128xf32> to vector<8x128xf32>
    %14 = arith.addf %11, %13 : vector<8x128xf32>
    %cst_11 = arith.constant 0.000000e+00 : f32
    %15 = vector.broadcast %cst_11 : f32 to vector<8x128xf32>
    %16 = arith.maximumf %14, %15 : vector<8x128xf32>
    %17 = arith.truncf %16 : vector<8x128xf32> to vector<8x128xbf16>
    %c0_12 = arith.constant 0 : index
    %c0_13 = arith.constant 0 : index
    %18 = vector.load %arg6[%c0_12, %c0_13] : memref<128x100xbf16, #tpu.memory_space<vmem>>, vector<128x100xbf16>
    %cst_14 = arith.constant dense<0.000000e+00> : vector<8x100xf32>
    %19 = tpu.matmul %17, %18, %cst_14 {dimension_numbers = #tpu.dot_dimension_numbers<[1], [0], [0], [1], [0, 0, 1, 1], [], []>} : vector<8x128xbf16>, vector<128x100xbf16>, vector<8x100xf32> -> vector<8x100xf32>
    %c0_15 = arith.constant 0 : index
    %c0_16 = arith.constant 0 : index
    %20 = vector.load %arg7[%c0_15, %c0_16] : memref<1x100xf32, #tpu.memory_space<vmem>>, vector<1x100xf32>
    %21 = vector.broadcast %20 : vector<1x100xf32> to vector<8x100xf32>
    %22 = arith.addf %19, %21 : vector<8x100xf32>
    %cst_17 = arith.constant 0.000000e+00 : f32
    %23 = vector.broadcast %cst_17 : f32 to vector<8x100xf32>
    %24 = arith.maximumf %22, %23 : vector<8x100xf32>
    %c0_18 = arith.constant 0 : index
    %c0_19 = arith.constant 0 : index
    %25 = vector.load %arg8[%c0_18, %c0_19] : memref<8x100xf32, #tpu.memory_space<vmem>>, vector<8x100xf32>
    tpu.vector_store %arg8[%c0_18, %c0_19], %24 {strides = array<i32>} : memref<8x100xf32, #tpu.memory_space<vmem>>, vector<8x100xf32>,
    return
  }
  func.func @transform_0(%arg0: i32) -> (i32, i32) {
    %c0_i32 = arith.constant 0 : i32
    %c0_i32_0 = arith.constant 0 : i32
    return %arg0, %c0_i32 : i32, i32
  }
  func.func @transform_1(%arg0: i32) -> (i32, i32) {
    %c0_i32 = arith.constant 0 : i32
    %c0_i32_0 = arith.constant 0 : i32
    %c0_i32_1 = arith.constant 0 : i32
    return %c0_i32, %c0_i32_0 : i32, i32
  }
  func.func @transform_2(%arg0: i32) -> (i32, i32) {
    %c0_i32 = arith.constant 0 : i32
    %c0_i32_0 = arith.constant 0 : i32
    %c0_i32_1 = arith.constant 0 : i32
    return %c0_i32, %c0_i32_0 : i32, i32
  }
  func.func @transform_3(%arg0: i32) -> (i32, i32) {
    %c0_i32 = arith.constant 0 : i32
    %c0_i32_0 = arith.constant 0 : i32
    %c0_i32_1 = arith.constant 0 : i32
    return %c0_i32, %c0_i32_0 : i32, i32
  }
  func.func @transform_4(%arg0: i32) -> (i32, i32) {
    %c0_i32 = arith.constant 0 : i32
    %c0_i32_0 = arith.constant 0 : i32
    %c0_i32_1 = arith.constant 0 : i32
    return %c0_i32, %c0_i32_0 : i32, i32
  }
  func.func @transform_5(%arg0: i32) -> (i32, i32) {
    %c0_i32 = arith.constant 0 : i32
    %c0_i32_0 = arith.constant 0 : i32
    %c0_i32_1 = arith.constant 0 : i32
    return %c0_i32, %c0_i32_0 : i32, i32
  }
  func.func @transform_6(%arg0: i32) -> (i32, i32) {
    %c0_i32 = arith.constant 0 : i32
    %c0_i32_0 = arith.constant 0 : i32
    %c0_i32_1 = arith.constant 0 : i32
    return %c0_i32, %c0_i32_0 : i32, i32
  }
  func.func @transform_7(%arg0: i32) -> (i32, i32) {
    %c0_i32 = arith.constant 0 : i32
    %c0_i32_0 = arith.constant 0 : i32
    return %arg0, %c0_i32 : i32, i32
  }
}

</mosaic_0001>

<bundles_post_ra>
// kernel: dqn_forward.1
= control target key start
LH: loop header
LB: loop body
LE: loop exit
PB: predicated region body
PF: predicated region fallthrough
CT: control target
= control target key end

     0   :  { %12 = vsyncpa [#allocation3], 0  ;;  %s819_s0 = inlined_call_operand.hbm [shape: f32[8,120], index: 0, kind: input, shape index: {}]   ;;  %s820_s1 = inlined_call_operand.vmem [shape: bf16[120,128], index: 1, kind: input, shape index: {}]   ;;  %s821_s2 = inlined_call_operand.vmem [shape: f32[1,128], index: 2, kind: input, shape index: {}]   ;;  %s822_s3 = inlined_call_operand.vmem [shape: bf16[128,128], index: 3, kind: input, shape index: {}]   ;;  %s823_s4 = inlined_call_operand.hbm [shape: f32[1,128], index: 4, kind: input, shape index: {}]   ;;  %s824_s5 = inlined_call_operand.vmem [shape: bf16[128,100], index: 5, kind: input, shape index: {}]   ;;  %s825_s6 = inlined_call_operand.hbm [shape: f32[1,100], index: 6, kind: input, shape index: {}]   ;;  %s826_s7 = inlined_call_operand.hbm [shape: f32[8,100], index: 7, kind: output, shape index: {}]  }
   0x1   :  { %13 = vsyncpa [#allocation6], 0 }
   0x2   :  { %14 = vsyncpa [#allocation4], 0  ;;  %s656_s24 = smov [#allocation5]   ;;  %s657_s26 = smov [#allocation2]  }
   0x3   :  { %s37_s25 = sshll.u32 %s656_s24, 4  ;;  %s21_s27 = sshll.u32 %s657_s26, 4  ;;  %s38_s25 = int_to_ptr.vmem [resolvable:$true] %s37_s25  ;;  %s22_s27 = int_to_ptr.vmem [resolvable:$true] %s21_s27 }
   0x4   :  { %s578_s28 = scalar_lea.vmem %s38_s25, 16  ;;  %s582_s29 = scalar_lea.vmem %s38_s25, 32 }
   0x5   :  { %p579_p0 = scmp.ne.s32.totalorder %s38_s25, %s578_s28  ;;  %p583_p1 = scmp.lt.s32.totalorder %s38_s25, %s38_s25 }
   0x6   :  { %p584_p2 = scmp.lt.s32.totalorder %s582_s29, %s578_s28 }
   0x8   :  { %p585_p3 = por %p584_p2, %p583_p1 }
   0xa   :  { %p586_p4 = pnand %p585_p3, %p579_p0 }
   0xc   :  { %589 = shalt.err (!%p586_p4)
}
   0xd   :  { %40 = dma.hbm_to_vmem [thread:$0]  %s823_s4, 16, %s38_s25, [#allocation6]  }
   0xe   :  { %s598_s9 = scalar_lea.vmem %s22_s27, 128  ;;  %p603_p6 = scmp.lt.s32.totalorder %s22_s27, %s22_s27 }
   0xf   :  { %p599_p5 = scmp.ne.s32.totalorder %s22_s27, %s598_s9  ;;  %p604_p7 = scmp.lt.s32.totalorder %s598_s9, %s598_s9 }
  0x11   :  { %p605_p8 = por %p604_p7, %p603_p6 }
  0x13   :  { %p606_p9 = pnand %p605_p8, %p599_p5 }
  0x15   :  { %609 = shalt.err (!%p606_p9)
}
  0x16   :  { %24 = dma.hbm_to_vmem [thread:$0]  %s819_s0, 128, %s22_s27, [#allocation3]  }
  0x17   :  { %s658_s12 = smov [#allocation7]  }
  0x18   :  { %s49_s13 = sshll.u32 %s658_s12, 4  ;;  %s50_s13 = int_to_ptr.vmem [resolvable:$true] %s49_s13 }
  0x19   :  { %s618_s14 = scalar_lea.vmem %s50_s13, 16  ;;  %s622_s15 = scalar_lea.vmem %s50_s13, 32 }
  0x1a   :  { %p619_p10 = scmp.ne.s32.totalorder %s50_s13, %s618_s14  ;;  %p623_p11 = scmp.lt.s32.totalorder %s50_s13, %s50_s13 }
  0x1b   :  { %p624_p12 = scmp.lt.s32.totalorder %s622_s15, %s618_s14 }
  0x1d   :  { %p625_p13 = por %p624_p12, %p623_p11 }
  0x1f   :  { %p626_p0 = pnand %p625_p13, %p619_p10 }
  0x21   :  { %629 = shalt.err (!%p626_p0)
}
  0x22   :  { %52 = dma.hbm_to_vmem [thread:$0]  %s825_s6, 16, %s50_s13, [#allocation6]  }
  0x23   :  { %650 = dma.done.wait [#allocation3], 128  }
  0x24   :  { %651 = vsyncadd [#allocation3], 4294967168 }
  0x25   :  { %652 = dma.done.wait [#allocation6], 32  }
  0x26   :  { %653 = vsyncadd [#allocation6], 4294967264  ;;  %v659_v0 = vmov 0.0   ;;  %vm660_vm0 = vmmov 0   ;;  %vm136_vm1 = vcmask 1043456   ;;  %v547_v3 = vld [vmem:[%s820_s1 + $0x30] sm:$0xff]  }
  0x27   :  { %480 = vmatprep.subr.bf16.mxu0 %v659_v0  ;;  %496 = vmatprep.mubr.msk.bf16.mxu0 %vm660_vm0, %v659_v0  ;;  %v546_v1 = vld [vmem:[%s820_s1 + $0x38] ss:$0 sps:$4 sm:$0xff]   ;;  %v548_v4 = vld [vmem:[%s820_s1 + $0x28] sm:$0xff]   ;;  %v555_v6 = vld [vmem:[%s822_s3 + $0x30] sm:$0xff]   ;;  %vm132_vm2 = vcmask 982016   ;;  %vm407_vm3 = vcmask 818176  }
  0x28   :  { %500 = vmatprep.subr.bf16.mxu1 %v659_v0  ;;  %516 = vmatprep.mubr.msk.bf16.mxu1 %vm660_vm0, %v659_v0  ;;  %v138_v2 = vsel %vm136_vm1, %v546_v1, 0  ;;  %v554_v5 = vld [vmem:[%s822_s3 + $0x38] sm:$0xff]   ;;  %v549_v7 = vld [vmem:[%s820_s1 + $0x20] sm:$0xff]   ;;  %v556_v9 = vld [vmem:[%s822_s3 + $0x28] sm:$0xff]  }
  0x29   :  { %481 = vmatpush3.bf16.msra.mxu0 %v138_v2  ;;  %501 = vmatpush3.bf16.msra.mxu1 %v554_v5  ;;  %v550_v8 = vld [vmem:[%s820_s1 + $0x18] sm:$0xff]   ;;  %v557_v10 = vld [vmem:[%s822_s3 + $0x20] sm:$0xff]   ;;  %v551_v11 = vld [vmem:[%s820_s1 + $0x10] sm:$0xff]  }
  0x2a   :  { %482 = vmatprep.subr.bf16.mxu0 %v659_v0  ;;  %502 = vmatprep.subr.bf16.mxu1 %v659_v0  ;;  %v558_v12 = vld [vmem:[%s822_s3 + $0x18] sm:$0xff]   ;;  %v552_v13 = vld [vmem:[%s820_s1 + $0x8] sm:$0xff]   ;;  %v559_v14 = vld [vmem:[%s822_s3 + $0x10] sm:$0xff]  }
  0x2b   :  { %v553_v15 = vld [vmem:[%s820_s1] sm:$0xff]   ;;  %v560_v18 = vld [vmem:[%s822_s3 + $0x8] sm:$0xff]   ;;  %v562_v20 = vld [vmem:[%s824_s5 + $0x38] sm:$0xff]  }
  0x2c   :  { %v63_v16 = vld [vmem:[#allocation2] sm:$0xff]  ;;  %v563_v21 = vld [vmem:[%s824_s5 + $0x30] sm:$0xff]   ;;  %v564_v22 = vld [vmem:[%s824_s5 + $0x28] sm:$0xff]  }
  0x2d   :  { %483 = vmatpush3.bf16.msra.mxu0 %v547_v3  ;;  %503 = vmatpush3.bf16.msra.mxu1 %v555_v6  ;;  %v64_v17 = vpack.c.bf16 %v63_v16, %v63_v16  ;;  %v561_v19 = vld [vmem:[%s822_s3] sm:$0xff]   ;;  %v566_v24 = vld [vmem:[%s824_s5 + $0x18] sm:$0xff]   ;;  %v567_v25 = vld [vmem:[%s824_s5 + $0x10] sm:$0xff]  }
  0x2e   :  { %484 = vmatprep.subr.bf16.mxu0 %v659_v0  ;;  %504 = vmatprep.subr.bf16.mxu1 %v659_v0  ;;  %v565_v23 = vld [vmem:[%s824_s5 + $0x20] sm:$0xff]   ;;  %v568_v34 = vld [vmem:[%s824_s5 + $0x8] sm:$0xff]  }
  0x2f   :  { %v425_v26 = vld [vmem:[%s821_s2] ss:$0 sm:$0xff]  ;;  %v435_v36 = vld [vmem:[#allocation5] ss:$0 sm:$0xff]  ;;  %v444_v44 = vld [vmem:[#allocation7] ss:$0 sm:$0xff] }
  0x30   :  { %v569_v35 = vld [vmem:[%s824_s5] sm:$0xff]   ;;  %s661_s2 = smov [#allocation8]  }
  0x31   :  { %485 = vmatpush3.bf16.msra.mxu0 %v548_v4  ;;  %505 = vmatpush3.bf16.msra.mxu1 %v556_v9  ;;  %s415_s14 = sshll.u32 %s661_s2, 4  ;;  %s416_s14 = int_to_ptr.vmem [resolvable:$true] %s415_s14 }
  0x32   :  { %486 = vmatprep.subr.bf16.mxu0 %v659_v0  ;;  %506 = vmatprep.subr.bf16.mxu1 %v659_v0  ;;  %s630_s5 = scalar_lea.vmem %s416_s14, 128  ;;  %p635_p2 = scmp.lt.s32.totalorder %s416_s14, %s416_s14 }
  0x33   :  { %p631_p1 = scmp.ne.s32.totalorder %s416_s14, %s630_s5  ;;  %p636_p3 = scmp.lt.s32.totalorder %s630_s5, %s630_s5 }
  0x35   :  { %487 = vmatpush3.bf16.msra.mxu0 %v549_v7  ;;  %507 = vmatpush3.bf16.msra.mxu1 %v557_v10  ;;  %p637_p4 = por %p636_p3, %p635_p2 }
  0x36   :  { %488 = vmatprep.subr.bf16.mxu0 %v659_v0  ;;  %508 = vmatprep.subr.bf16.mxu1 %v659_v0 }
  0x37   :  { %p638_p5 = pnand %p637_p4, %p631_p1 }
  0x39   :  { %489 = vmatpush3.bf16.msra.mxu0 %v550_v8  ;;  %509 = vmatpush3.bf16.msra.mxu1 %v558_v12 }
  0x3a   :  { %490 = vmatprep.subr.bf16.mxu0 %v659_v0  ;;  %510 = vmatprep.subr.bf16.mxu1 %v659_v0 }
  0x3d   :  { %491 = vmatpush3.bf16.msra.mxu0 %v551_v11  ;;  %511 = vmatpush3.bf16.msra.mxu1 %v559_v14 }
  0x3e   :  { %492 = vmatprep.subr.bf16.mxu0 %v659_v0  ;;  %512 = vmatprep.subr.bf16.mxu1 %v659_v0 }
  0x41   :  { %493 = vmatpush3.bf16.msra.mxu0 %v552_v13  ;;  %513 = vmatpush3.bf16.msra.mxu1 %v560_v18 }
  0x42   :  { %494 = vmatprep.subr.bf16.mxu0 %v659_v0  ;;  %514 = vmatprep.subr.bf16.mxu1 %v659_v0 }
  0x45   :  { %495 = vmatpush3.bf16.msra.mxu0 %v553_v15  ;;  %515 = vmatpush3.bf16.msra.mxu1 %v561_v19 }
  0x46   :  { %520 = vmatprep.subr.bf16.mxu0 %v659_v0 }
  0x48   :  { %497 = vmatmul.mubr.msk.bf16.vlgmr.msra.gmra.mxu0 %vm132_vm2, %v64_v17 }
  0x49   :  { %536 = vmatprep.mubr.msk.bf16.mxu0 %vm660_vm0, %v659_v0  ;;  %521 = vmatpush3.bf16.msra.mxu0 %v562_v20 }
  0x4a   :  { %522 = vmatprep.subr.bf16.mxu0 %v659_v0 }
  0x4d   :  { %523 = vmatpush3.bf16.msra.mxu0 %v563_v21 }
  0x4e   :  { %524 = vmatprep.subr.bf16.mxu0 %v659_v0 }
  0x51   :  { %525 = vmatpush3.bf16.msra.mxu0 %v564_v22 }
  0x52   :  { %526 = vmatprep.subr.bf16.mxu0 %v659_v0 }
  0x55   :  { %527 = vmatpush3.bf16.msra.mxu0 %v565_v23 }
  0x56   :  { %528 = vmatprep.subr.bf16.mxu0 %v659_v0 }
  0x59   :  { %529 = vmatpush3.bf16.msra.mxu0 %v566_v24 }
  0x5a   :  { %530 = vmatprep.subr.bf16.mxu0 %v659_v0 }
  0x5d   :  { %531 = vmatpush3.bf16.msra.mxu0 %v567_v25 }
  0x5e   :  { %532 = vmatprep.subr.bf16.mxu0 %v659_v0 }
  0x61   :  { %533 = vmatpush3.bf16.msra.mxu0 %v568_v34 }
  0x62   :  { %534 = vmatprep.subr.bf16.mxu0 %v659_v0 }
  0x65   :  { %535 = vmatpush3.bf16.msra.mxu0 %v569_v35 }
 0x108   :  { %v174_v27 = vpop.f32.mrf.mxu0 }
 0x109   :  { %v175_v28 = vadd.f32 %v425_v26, %v174_v27 }
 0x10a   :  { %v498_v29 = vpop.f32.mrf.mxu0 }
 0x10b   :  { %v180_v30 = vmax.f32 %v175_v28, 0.0 }
 0x10c   :  { %v177_v31 = vpop.f32.mrf.mxu0 }
 0x10d   :  { %v181_v32 = vpack.c.bf16 %v180_v30, %v180_v30 }
 0x10e   :  { %v499_v33 = vpop.f32.mrf.mxu0 }
 0x10f   :  { %517 = vmatmul.mubr.bf16.vlgmr.msra.gmra.mxu1 %v181_v32 }
 0x1cf   :  { %v287_v37 = vpop.f32.mrf.mxu1 }
 0x1d0   :  { %v288_v38 = vadd.f32 %v435_v36, %v287_v37 }
 0x1d1   :  { %v518_v39 = vpop.f32.mrf.mxu1 }
 0x1d2   :  { %v293_v40 = vmax.f32 %v288_v38, 0.0 }
 0x1d3   :  { %v290_v41 = vpop.f32.mrf.mxu1 }
 0x1d4   :  { %v294_v42 = vpack.c.bf16 %v293_v40, %v293_v40 }
 0x1d5   :  { %v519_v43 = vpop.f32.mrf.mxu1 }
 0x1d6   :  { %537 = vmatmul.mubr.bf16.vlgmr.msra.gmra.mxu0 %v294_v42 }
 0x296   :  { %v400_v45 = vpop.f32.mrf.mxu0 }
 0x297   :  { %v401_v46 = vadd.f32 %v444_v44, %v400_v45 }
 0x298   :  { %v538_v47 = vpop.f32.mrf.mxu0 }
 0x299   :  { %v406_v48 = vmax.f32 %v401_v46, 0.0 }
 0x29a   :  { %v403_v49 = vpop.f32.mrf.mxu0 }
 0x29b   :  { %408 = vst.msk [vmem:[#allocation8] sm:$0xff] %vm407_vm3, %v406_v48 }
 0x29c   :  { %v539_v50 = vpop.f32.mrf.mxu0 }
 0x29d   :  { %641 = shalt.err (!%p638_p5)
}
 0x29e   :  { %418 = dma.vmem_to_hbm [thread:$0]  %s416_s14, 128, %s826_s7, [#allocation4]  }
 0x29f   :  { %654 = dma.done.wait [#allocation4], 128  }
 0x2a0   :  { %655 = vsyncadd [#allocation4], 4294967168 }
 0x2a1   :  { %422 = vsyncpa [#allocation3], 1 }
 0x2a2   :  { %423 = vsyncpa [#allocation6], 1 }
 0x2a3   :  { %424 = vsyncpa [#allocation4], 1 }

</bundles_post_ra>
